<compile_context>
chip_gen: v6e
topology: v6e:2x2x1
jax: 0.10.0
libtpu: 0.0.40
codegen_flags: <defaults>
</compile_context>

<pallas_src>
import math

import jax
import jax.numpy as jnp
from jax.experimental import pallas as pl
from jax.experimental.pallas import tpu as pltpu


def classifier_mlp_kernel(
    x_ref,
    w_in_ref, b_in_ref,
    w_h1_ref, b_h1_ref,
    w_h2_ref, b_h2_ref,
    w_h3_ref, b_h3_ref,
    w_out_ref, b_out_ref,
    o_ref,
):
    # Hot path: 5 bf16 matmuls (f32 accumulate) + bias + ReLU/Sigmoid, fused per batch tile.
    h = x_ref[...].astype(jnp.bfloat16)

    h = jnp.dot(h, w_in_ref[...], preferred_element_type=jnp.float32) + b_in_ref[...]
    h = jnp.maximum(h, 0.0).astype(jnp.bfloat16)          # ReLU(linearIn)

    h = jnp.dot(h, w_h1_ref[...], preferred_element_type=jnp.float32) + b_h1_ref[...]
    h = jnp.maximum(h, 0.0).astype(jnp.bfloat16)          # ReLU(drop(linearHidden))  [dropout=id]

    h = jnp.dot(h, w_h2_ref[...], preferred_element_type=jnp.float32) + b_h2_ref[...]
    h = jnp.maximum(h, 0.0).astype(jnp.bfloat16)          # ReLU(drop(linearHidden2)) [dropout=id]

    h = jnp.dot(h, w_h3_ref[...], preferred_element_type=jnp.float32) + b_h3_ref[...]
    h = jnp.maximum(h, 0.0).astype(jnp.bfloat16)          # ReLU(drop(linearHidden3)) [dropout=id]

    logits = jnp.dot(h, w_out_ref[...], preferred_element_type=jnp.float32) + b_out_ref[...]
    o_ref[...] = jax.nn.sigmoid(logits)                   # padded cols -> 0.5, sliced off in wrapper


def _round_up(x, m):
    return ((x + m - 1) // m) * m


def prepare_params(params):
    """One-time transform of PyTorch-layout params into kernel layout.

    Weights become [in, out] bfloat16 (MXU operands), biases [1, out] float32
    (accumulator dtype), and the output layer is zero-padded along the output
    dim to a multiple of 128 lanes so the kernel's store is lane-dense.
    Call this ONCE, outside the forward path.
    """
    def wb(name):
        W, b = params[name]
        return W.T.astype(jnp.bfloat16), b.reshape(1, -1).astype(jnp.float32)

    w_in, b_in = wb("linearIn")
    w_h1, b_h1 = wb("linearHidden")
    w_h2, b_h2 = wb("linearHidden2")
    w_h3, b_h3 = wb("linearHidden3")
    w_out, b_out = wb("linearOut")

    outsize = w_out.shape[1]
    out_pad = _round_up(outsize, 128)
    if out_pad != outsize:
        w_out = jnp.pad(w_out, ((0, 0), (0, out_pad - outsize)))
        b_out = jnp.pad(b_out, ((0, 0), (0, out_pad - outsize)))

    return {
        "weights": (w_in, b_in, w_h1, b_h1, w_h2, b_h2, w_h3, b_h3, w_out, b_out),
        "insize": w_in.shape[0],
        "hidden": w_in.shape[1],
        "outsize": outsize,
        "out_pad": out_pad,
    }


def _choose_tile_b(B, cap=4096):
    """Fat batch tiles; >=2 grid steps once B is big enough (v7x dual-TC)."""
    if B < 1024:
        return _round_up(B, 8)                     # single fat step (latency path)
    return min(cap, _round_up(pl.cdiv(B, 2), 8))   # >=2 steps -> both v7x TensorCores


def classifier_nn_forward(x, prepared, *, tile_b=None):
    """x: [B, insize] float32.  prepared: output of prepare_params()."""
    B, insize = x.shape
    (w_in, b_in, w_h1, b_h1, w_h2, b_h2, w_h3, b_h3, w_out, b_out) = prepared["weights"]
    hidden = prepared["hidden"]
    outsize = prepared["outsize"]
    out_pad = prepared["out_pad"]

    if tile_b is None:
        tile_b = _choose_tile_b(B)

    # Ragged batch: zero-pad rows up to a multiple of tile_b (cheap; keeps fat tiles).
    B_pad = _round_up(B, tile_b)
    if B_pad != B:
        x = jnp.pad(x, ((0, B_pad - B), (0, 0)))
    grid = B_pad // tile_b

    # Full-array resident blocks for the (small) weights; tile only the batch dim.
    full = lambda arr: pl.BlockSpec(arr.shape, lambda i: (0, 0))

    grid_spec = pltpu.PrefetchScalarGridSpec(
        num_scalar_prefetch=0,
        grid=(grid,),
        in_specs=[
            pl.BlockSpec((tile_b, insize), lambda i: (i, 0)),
            full(w_in), full(b_in),
            full(w_h1), full(b_h1),
            full(w_h2), full(b_h2),
            full(w_h3), full(b_h3),
            full(w_out), full(b_out),
        ],
        out_specs=pl.BlockSpec((tile_b, out_pad), lambda i: (i, 0)),
    )

    # Advisory cost hint so XLA schedules this tiny, latency-dominated kernel well.
    flops = 2 * B_pad * (insize * hidden + 3 * hidden * hidden + hidden * out_pad)
    weight_bytes = sum(
        int(a.size) * a.dtype.itemsize
        for a in (w_in, b_in, w_h1, b_h1, w_h2, b_h2, w_h3, b_h3, w_out, b_out)
    )
    bytes_accessed = B_pad * insize * 4 + weight_bytes + B_pad * out_pad * 4
    cost = pl.CostEstimate(
        flops=int(flops),
        transcendentals=int(B_pad * out_pad),
        bytes_accessed=int(bytes_accessed),
    )

    out_padded = pl.pallas_call(
        classifier_mlp_kernel,
        out_shape=jax.ShapeDtypeStruct((B_pad, out_pad), jnp.float32),
        grid_spec=grid_spec,
        compiler_params=pltpu.CompilerParams(dimension_semantics=("parallel",)),
        cost_estimate=cost,
    )(x, w_in, b_in, w_h1, b_h1, w_h2, b_h2, w_h3, b_h3, w_out, b_out)

    # Slice back to true batch rows and output width (padded cols are sigmoid(0)=0.5; never consumed).
    return out_padded[:B, :outsize]


def init_params(key, insize, outsize, hidden):
    """Deterministic PyTorch-style init: U(-1/sqrt(fan_in), 1/sqrt(fan_in)) for W and b."""
    shapes = {
        "linearIn": (hidden, insize),
        "linearHidden": (hidden, hidden),
        "linearHidden2": (hidden, hidden),
        "linearHidden3": (hidden, hidden),
        "linearOut": (outsize, hidden),
    }
    params = {}
    for name, (fan_out, fan_in) in shapes.items():
        key, kw, kb = jax.random.split(key, 3)
        bound = 1.0 / math.sqrt(fan_in)
        W = jax.random.uniform(kw, (fan_out, fan_in), jnp.float32, -bound, bound)
        b = jax.random.uniform(kb, (fan_out,), jnp.float32, -bound, bound)
        params[name] = (W, b)
    return params


def reference_forward(x, params):
    """Plain-JAX f32 reference matching the PyTorch forward (eval mode)."""
    def lin(h, name):
        W, b = params[name]
        return h @ W.T + b

    h = jax.nn.relu(lin(x, "linearIn"))
    h = jax.nn.relu(lin(h, "linearHidden"))
    h = jax.nn.relu(lin(h, "linearHidden2"))
    h = jax.nn.relu(lin(h, "linearHidden3"))
    return jax.nn.sigmoid(lin(h, "linearOut"))


if __name__ == "__main__":
    key = jax.random.PRNGKey(0)
    k_x, k_p = jax.random.split(key)

    batch, insize, hidden, outsize = 16, 32, 64, 8
    x = jax.random.normal(k_x, (batch, insize), jnp.float32)
    params = init_params(k_p, insize, outsize, hidden)

    # One-time layout prep (hoisted out of the forward path).
    prepared = prepare_params(params)

    out = classifier_nn_forward(x, prepared)   # single grid step for B=16
    out = jax.block_until_ready(out)

    ref = reference_forward(x, params)
    assert out.shape == (batch, outsize)
    # bf16 MXU operands with f32 accumulation: compare against the f32 reference
    # with a relaxed tolerance (sigmoid outputs are in [0, 1]).
    assert jnp.allclose(out, ref, atol=2e-2, rtol=2e-2), "mismatch vs reference"

    print("KERNEL_OK")
</pallas_src>

<mosaic_0001>
module attributes {stable_mosaic.version = 11 : i64} {
  func.func @classifier_mlp_kernel(%arg0: i32, %arg1: memref<16x32xf32, #tpu.memory_space<vmem>>, %arg2: memref<32x64xbf16, #tpu.memory_space<vmem>>, %arg3: memref<1x64xf32, #tpu.memory_space<vmem>>, %arg4: memref<64x64xbf16, #tpu.memory_space<vmem>>, %arg5: memref<1x64xf32, #tpu.memory_space<vmem>>, %arg6: memref<64x64xbf16, #tpu.memory_space<vmem>>, %arg7: memref<1x64xf32, #tpu.memory_space<vmem>>, %arg8: memref<64x64xbf16, #tpu.memory_space<vmem>>, %arg9: memref<1x64xf32, #tpu.memory_space<vmem>>, %arg10: memref<64x128xbf16, #tpu.memory_space<vmem>>, %arg11: memref<1x128xf32, #tpu.memory_space<vmem>>, %arg12: memref<16x128xf32, #tpu.memory_space<vmem>>) attributes {dimension_semantics = [#tpu.dimension_semantics<parallel>], iteration_bounds = array<i64: 1>, scalar_prefetch = 0 : i64, scratch_operands = 0 : i64, tpu.core_type = #tpu.core_type<tc>, window_params = [{transform_indices = @transform_0, window_bounds = array<i64: 16, 32>}, {pipeline_mode = #tpu.pipeline_mode<synchronous>, transform_indices = @transform_1, window_bounds = array<i64: 32, 64>}, {pipeline_mode = #tpu.pipeline_mode<synchronous>, transform_indices = @transform_2, window_bounds = array<i64: 1, 64>}, {pipeline_mode = #tpu.pipeline_mode<synchronous>, transform_indices = @transform_3, window_bounds = array<i64: 64, 64>}, {pipeline_mode = #tpu.pipeline_mode<synchronous>, transform_indices = @transform_4, window_bounds = array<i64: 1, 64>}, {pipeline_mode = #tpu.pipeline_mode<synchronous>, transform_indices = @transform_5, window_bounds = array<i64: 64, 64>}, {pipeline_mode = #tpu.pipeline_mode<synchronous>, transform_indices = @transform_6, window_bounds = array<i64: 1, 64>}, {pipeline_mode = #tpu.pipeline_mode<synchronous>, transform_indices = @transform_7, window_bounds = array<i64: 64, 64>}, {pipeline_mode = #tpu.pipeline_mode<synchronous>, transform_indices = @transform_8, window_bounds = array<i64: 1, 64>}, {pipeline_mode = #tpu.pipeline_mode<synchronous>, transform_indices = @transform_9, window_bounds = array<i64: 64, 128>}, {pipeline_mode = #tpu.pipeline_mode<synchronous>, transform_indices = @transform_10, window_bounds = array<i64: 1, 128>}, {transform_indices = @transform_11, window_bounds = array<i64: 16, 128>}]} {
    %c0 = arith.constant 0 : index
    %c0_0 = arith.constant 0 : index
    %0 = vector.load %arg1[%c0, %c0_0] : memref<16x32xf32, #tpu.memory_space<vmem>>, vector<16x32xf32>
    %1 = arith.truncf %0 : vector<16x32xf32> to vector<16x32xbf16>
    %c0_1 = arith.constant 0 : index
    %c0_2 = arith.constant 0 : index
    %2 = vector.load %arg2[%c0_1, %c0_2] : memref<32x64xbf16, #tpu.memory_space<vmem>>, vector<32x64xbf16>
    %cst = arith.constant dense<0.000000e+00> : vector<16x64xf32>
    %3 = tpu.matmul %1, %2, %cst {dimension_numbers = #tpu.dot_dimension_numbers<[1], [0], [0], [1], [0, 0, 1, 1], [], []>} : vector<16x32xbf16>, vector<32x64xbf16>, vector<16x64xf32> -> vector<16x64xf32>
    %c0_3 = arith.constant 0 : index
    %c0_4 = arith.constant 0 : index
    %4 = vector.load %arg3[%c0_3, %c0_4] : memref<1x64xf32, #tpu.memory_space<vmem>>, vector<1x64xf32>
    %5 = vector.broadcast %4 : vector<1x64xf32> to vector<16x64xf32>
    %6 = arith.addf %3, %5 : vector<16x64xf32>
    %cst_5 = arith.constant 0.000000e+00 : f32
    %7 = vector.broadcast %cst_5 : f32 to vector<16x64xf32>
    %8 = arith.maximumf %6, %7 : vector<16x64xf32>
    %9 = arith.truncf %8 : vector<16x64xf32> to vector<16x64xbf16>
    %c0_6 = arith.constant 0 : index
    %c0_7 = arith.constant 0 : index
    %10 = vector.load %arg4[%c0_6, %c0_7] : memref<64x64xbf16, #tpu.memory_space<vmem>>, vector<64x64xbf16>
    %cst_8 = arith.constant dense<0.000000e+00> : vector<16x64xf32>
    %11 = tpu.matmul %9, %10, %cst_8 {dimension_numbers = #tpu.dot_dimension_numbers<[1], [0], [0], [1], [0, 0, 1, 1], [], []>} : vector<16x64xbf16>, vector<64x64xbf16>, vector<16x64xf32> -> vector<16x64xf32>
    %c0_9 = arith.constant 0 : index
    %c0_10 = arith.constant 0 : index
    %12 = vector.load %arg5[%c0_9, %c0_10] : memref<1x64xf32, #tpu.memory_space<vmem>>, vector<1x64xf32>
    %13 = vector.broadcast %12 : vector<1x64xf32> to vector<16x64xf32>
    %14 = arith.addf %11, %13 : vector<16x64xf32>
    %cst_11 = arith.constant 0.000000e+00 : f32
    %15 = vector.broadcast %cst_11 : f32 to vector<16x64xf32>
    %16 = arith.maximumf %14, %15 : vector<16x64xf32>
    %17 = arith.truncf %16 : vector<16x64xf32> to vector<16x64xbf16>
    %c0_12 = arith.constant 0 : index
    %c0_13 = arith.constant 0 : index
    %18 = vector.load %arg6[%c0_12, %c0_13] : memref<64x64xbf16, #tpu.memory_space<vmem>>, vector<64x64xbf16>
    %cst_14 = arith.constant dense<0.000000e+00> : vector<16x64xf32>
    %19 = tpu.matmul %17, %18, %cst_14 {dimension_numbers = #tpu.dot_dimension_numbers<[1], [0], [0], [1], [0, 0, 1, 1], [], []>} : vector<16x64xbf16>, vector<64x64xbf16>, vector<16x64xf32> -> vector<16x64xf32>
    %c0_15 = arith.constant 0 : index
    %c0_16 = arith.constant 0 : index
    %20 = vector.load %arg7[%c0_15, %c0_16] : memref<1x64xf32, #tpu.memory_space<vmem>>, vector<1x64xf32>
    %21 = vector.broadcast %20 : vector<1x64xf32> to vector<16x64xf32>
    %22 = arith.addf %19, %21 : vector<16x64xf32>
    %cst_17 = arith.constant 0.000000e+00 : f32
    %23 = vector.broadcast %cst_17 : f32 to vector<16x64xf32>
    %24 = arith.maximumf %22, %23 : vector<16x64xf32>
    %25 = arith.truncf %24 : vector<16x64xf32> to vector<16x64xbf16>
    %c0_18 = arith.constant 0 : index
    %c0_19 = arith.constant 0 : index
    %26 = vector.load %arg8[%c0_18, %c0_19] : memref<64x64xbf16, #tpu.memory_space<vmem>>, vector<64x64xbf16>
    %cst_20 = arith.constant dense<0.000000e+00> : vector<16x64xf32>
    %27 = tpu.matmul %25, %26, %cst_20 {dimension_numbers = #tpu.dot_dimension_numbers<[1], [0], [0], [1], [0, 0, 1, 1], [], []>} : vector<16x64xbf16>, vector<64x64xbf16>, vector<16x64xf32> -> vector<16x64xf32>
    %c0_21 = arith.constant 0 : index
    %c0_22 = arith.constant 0 : index
    %28 = vector.load %arg9[%c0_21, %c0_22] : memref<1x64xf32, #tpu.memory_space<vmem>>, vector<1x64xf32>
    %29 = vector.broadcast %28 : vector<1x64xf32> to vector<16x64xf32>
    %30 = arith.addf %27, %29 : vector<16x64xf32>
    %cst_23 = arith.constant 0.000000e+00 : f32
    %31 = vector.broadcast %cst_23 : f32 to vector<16x64xf32>
    %32 = arith.maximumf %30, %31 : vector<16x64xf32>
    %33 = arith.truncf %32 : vector<16x64xf32> to vector<16x64xbf16>
    %c0_24 = arith.constant 0 : index
    %c0_25 = arith.constant 0 : index
    %34 = vector.load %arg10[%c0_24, %c0_25] : memref<64x128xbf16, #tpu.memory_space<vmem>>, vector<64x128xbf16>
    %cst_26 = arith.constant dense<0.000000e+00> : vector<16x128xf32>
    %35 = tpu.matmul %33, %34, %cst_26 {dimension_numbers = #tpu.dot_dimension_numbers<[1], [0], [0], [1], [0, 0, 1, 1], [], []>} : vector<16x64xbf16>, vector<64x128xbf16>, vector<16x128xf32> -> vector<16x128xf32>
    %c0_27 = arith.constant 0 : index
    %c0_28 = arith.constant 0 : index
    %36 = vector.load %arg11[%c0_27, %c0_28] : memref<1x128xf32, #tpu.memory_space<vmem>>, vector<1x128xf32>
    %37 = vector.broadcast %36 : vector<1x128xf32> to vector<16x128xf32>
    %38 = arith.addf %35, %37 : vector<16x128xf32>
    %39 = arith.negf %38 : vector<16x128xf32>
    %40 = math.exp %39 : vector<16x128xf32>
    %cst_29 = arith.constant 1.000000e+00 : f32
    %41 = vector.broadcast %cst_29 : f32 to vector<16x128xf32>
    %42 = arith.addf %41, %40 : vector<16x128xf32>
    %43 = arith.divf %41, %42 : vector<16x128xf32>
    %c0_30 = arith.constant 0 : index
    %c0_31 = arith.constant 0 : index
    %44 = vector.load %arg12[%c0_30, %c0_31] : memref<16x128xf32, #tpu.memory_space<vmem>>, vector<16x128xf32>
    tpu.vector_store %arg12[%c0_30, %c0_31], %43 {strides = array<i32>} : memref<16x128xf32, #tpu.memory_space<vmem>>, vector<16x128xf32>,
    return
  }
  func.func @transform_0(%arg0: i32) -> (i32, i32) {
    %c0_i32 = arith.constant 0 : i32
    %c0_i32_0 = arith.constant 0 : i32
    return %arg0, %c0_i32 : i32, i32
  }
  func.func @transform_1(%arg0: i32) -> (i32, i32) {
    %c0_i32 = arith.constant 0 : i32
    %c0_i32_0 = arith.constant 0 : i32
    %c0_i32_1 = arith.constant 0 : i32
    return %c0_i32, %c0_i32_0 : i32, i32
  }
  func.func @transform_2(%arg0: i32) -> (i32, i32) {
    %c0_i32 = arith.constant 0 : i32
    %c0_i32_0 = arith.constant 0 : i32
    %c0_i32_1 = arith.constant 0 : i32
    return %c0_i32, %c0_i32_0 : i32, i32
  }
  func.func @transform_3(%arg0: i32) -> (i32, i32) {
    %c0_i32 = arith.constant 0 : i32
    %c0_i32_0 = arith.constant 0 : i32
    %c0_i32_1 = arith.constant 0 : i32
    return %c0_i32, %c0_i32_0 : i32, i32
  }
  func.func @transform_4(%arg0: i32) -> (i32, i32) {
    %c0_i32 = arith.constant 0 : i32
    %c0_i32_0 = arith.constant 0 : i32
    %c0_i32_1 = arith.constant 0 : i32
    return %c0_i32, %c0_i32_0 : i32, i32
  }
  func.func @transform_5(%arg0: i32) -> (i32, i32) {
    %c0_i32 = arith.constant 0 : i32
    %c0_i32_0 = arith.constant 0 : i32
    %c0_i32_1 = arith.constant 0 : i32
    return %c0_i32, %c0_i32_0 : i32, i32
  }
  func.func @transform_6(%arg0: i32) -> (i32, i32) {
    %c0_i32 = arith.constant 0 : i32
    %c0_i32_0 = arith.constant 0 : i32
    %c0_i32_1 = arith.constant 0 : i32
    return %c0_i32, %c0_i32_0 : i32, i32
  }
  func.func @transform_7(%arg0: i32) -> (i32, i32) {
    %c0_i32 = arith.constant 0 : i32
    %c0_i32_0 = arith.constant 0 : i32
    %c0_i32_1 = arith.constant 0 : i32
    return %c0_i32, %c0_i32_0 : i32, i32
  }
  func.func @transform_8(%arg0: i32) -> (i32, i32) {
    %c0_i32 = arith.constant 0 : i32
    %c0_i32_0 = arith.constant 0 : i32
    %c0_i32_1 = arith.constant 0 : i32
    return %c0_i32, %c0_i32_0 : i32, i32
  }
  func.func @transform_9(%arg0: i32) -> (i32, i32) {
    %c0_i32 = arith.constant 0 : i32
    %c0_i32_0 = arith.constant 0 : i32
    %c0_i32_1 = arith.constant 0 : i32
    return %c0_i32, %c0_i32_0 : i32, i32
  }
  func.func @transform_10(%arg0: i32) -> (i32, i32) {
    %c0_i32 = arith.constant 0 : i32
    %c0_i32_0 = arith.constant 0 : i32
    %c0_i32_1 = arith.constant 0 : i32
    return %c0_i32, %c0_i32_0 : i32, i32
  }
  func.func @transform_11(%arg0: i32) -> (i32, i32) {
    %c0_i32 = arith.constant 0 : i32
    %c0_i32_0 = arith.constant 0 : i32
    return %arg0, %c0_i32 : i32, i32
  }
}

</mosaic_0001>

<bundles_post_ra>
// kernel: tpu_custom_call.1
= control target key start
LH: loop header
LB: loop body
LE: loop exit
PB: predicated region body
PF: predicated region fallthrough
CT: control target
= control target key end

     0   :  { %16 = vsyncpa [#allocation3], 0  ;;  %s1032_s0 = inlined_call_operand.hbm [shape: f32[16,32], index: 0, kind: input, shape index: {}]   ;;  %s1033_s1 = inlined_call_operand.hbm [shape: bf16[32,64], index: 1, kind: input, shape index: {}]   ;;  %s1034_s2 = inlined_call_operand.vmem [shape: f32[1,64], index: 2, kind: input, shape index: {}]   ;;  %s1035_s3 = inlined_call_operand.hbm [shape: bf16[64,64], index: 3, kind: input, shape index: {}]   ;;  %s1036_s4 = inlined_call_operand.vmem [shape: f32[1,64], index: 4, kind: input, shape index: {}]   ;;  %s1037_s5 = inlined_call_operand.hbm [shape: bf16[64,64], index: 5, kind: input, shape index: {}]   ;;  %s1038_s6 = inlined_call_operand.vmem [shape: f32[1,64], index: 6, kind: input, shape index: {}]   ;;  %s1039_s7 = inlined_call_operand.hbm [shape: bf16[64,64], index: 7, kind: input, shape index: {}]   ;;  %s1040_s8 = inlined_call_operand.vmem [shape: f32[1,64], index: 8, kind: input, shape index: {}]   ;;  %s1041_s9 = inlined_call_operand.hbm [shape: bf16[64,128], index: 9, kind: input, shape index: {}]   ;;  %s1042_s10 = inlined_call_operand.vmem [shape: f32[1,128], index: 10, kind: input, shape index: {}]   ;;  %s1043_s11 = inlined_call_operand.hbm [shape: f32[16,128], index: 11, kind: output, shape index: {}]  }
   0x1   :  { %17 = vsyncpa [#allocation6], 0 }
   0x2   :  { %18 = vsyncpa [#allocation9], 0 }
   0x3   :  { %19 = vsyncpa [#allocation12], 0 }
   0x4   :  { %20 = vsyncpa [#allocation4], 0  ;;  %s870_s17 = smov [#allocation5]  }
   0x5   :  { %s38_s18 = sshll.u32 %s870_s17, 4  ;;  %s39_s18 = int_to_ptr.vmem [resolvable:$true] %s38_s18 }
   0x6   :  { %s728_s19 = scalar_lea.vmem %s39_s18, 256  ;;  %p733_p1 = scmp.lt.s32.totalorder %s39_s18, %s39_s18 }
   0x7   :  { %p729_p0 = scmp.ne.s32.totalorder %s39_s18, %s728_s19  ;;  %p734_p2 = scmp.lt.s32.totalorder %s728_s19, %s728_s19 }
   0x9   :  { %p735_p3 = por %p734_p2, %p733_p1 }
   0xb   :  { %p736_p4 = pnand %p735_p3, %p729_p0 }
   0xd   :  { %739 = shalt.err (!%p736_p4)
}
   0xe   :  { %s871_s20 = smov 64   ;;  %s872_s21 = smov 4  }
   0xf   :  { %44 = dma.hbm_to_vmem [thread:$0]  %s1033_s1, 256, %s39_s18, [#allocation6], %s871_s20, %s871_s20, %s872_s21  }
  0x10   :  { %s873_s24 = smov [#allocation8]   ;;  %s874_s26 = smov [#allocation2]  }
  0x11   :  { %s66_s25 = sshll.u32 %s873_s24, 4  ;;  %s26_s27 = sshll.u32 %s874_s26, 4  ;;  %s67_s25 = int_to_ptr.vmem [resolvable:$true] %s66_s25  ;;  %s27_s27 = int_to_ptr.vmem [resolvable:$true] %s26_s27 }
  0x12   :  { %s748_s28 = scalar_lea.vmem %s67_s25, 512  ;;  %p753_p6 = scmp.lt.s32.totalorder %s67_s25, %s67_s25 }
  0x13   :  { %p749_p5 = scmp.ne.s32.totalorder %s67_s25, %s748_s28  ;;  %p754_p7 = scmp.lt.s32.totalorder %s748_s28, %s748_s28 }
  0x15   :  { %p755_p8 = por %p754_p7, %p753_p6 }
  0x17   :  { %p756_p9 = pnand %p755_p8, %p749_p5 }
  0x19   :  { %759 = shalt.err (!%p756_p9)
}
  0x1a   :  { %72 = dma.hbm_to_vmem [thread:$0]  %s1037_s5, 512, %s67_s25, [#allocation9], %s871_s20, %s871_s20, %s872_s21  }
  0x1b   :  { %s768_s1 = scalar_lea.vmem %s27_s27, 256  ;;  %p773_p11 = scmp.lt.s32.totalorder %s27_s27, %s27_s27 }
  0x1c   :  { %p769_p10 = scmp.ne.s32.totalorder %s27_s27, %s768_s1  ;;  %p774_p12 = scmp.lt.s32.totalorder %s768_s1, %s768_s1 }
  0x1e   :  { %p775_p13 = por %p774_p12, %p773_p11 }
  0x20   :  { %p776_p0 = pnand %p775_p13, %p769_p10 }
  0x22   :  { %779 = shalt.err (!%p776_p0)
}
  0x23   :  { %s875_s12 = smov 128   ;;  %s876_s13 = smov 8  }
  0x24   :  { %32 = dma.hbm_to_vmem [thread:$0]  %s1032_s0, 256, %s27_s27, [#allocation3], %s875_s12, %s875_s12, %s876_s13  }
  0x25   :  { %s877_s16 = smov [#allocation7]   ;;  %s878_s5 = smov [#allocation10]  }
  0x26   :  { %s52_s17 = sshll.u32 %s877_s16, 4  ;;  %s80_s18 = sshll.u32 %s878_s5, 4  ;;  %s53_s17 = int_to_ptr.vmem [resolvable:$true] %s52_s17  ;;  %s81_s18 = int_to_ptr.vmem [resolvable:$true] %s80_s18 }
  0x27   :  { %s788_s19 = scalar_lea.vmem %s53_s17, 512  ;;  %p793_p2 = scmp.lt.s32.totalorder %s53_s17, %s53_s17 }
  0x28   :  { %p789_p1 = scmp.ne.s32.totalorder %s53_s17, %s788_s19  ;;  %p794_p3 = scmp.lt.s32.totalorder %s788_s19, %s788_s19 }
  0x2a   :  { %p795_p4 = por %p794_p3, %p793_p2 }
  0x2c   :  { %p796_p5 = pnand %p795_p4, %p789_p1 }
  0x2e   :  { %799 = shalt.err (!%p796_p5)
}
  0x2f   :  { %58 = dma.hbm_to_vmem [thread:$0]  %s1035_s3, 512, %s53_s17, [#allocation6], %s871_s20, %s871_s20, %s872_s21  }
  0x30   :  { %s808_s0 = scalar_lea.vmem %s81_s18, 512  ;;  %p813_p7 = scmp.lt.s32.totalorder %s81_s18, %s81_s18 }
  0x31   :  { %p809_p6 = scmp.ne.s32.totalorder %s81_s18, %s808_s0  ;;  %p814_p8 = scmp.lt.s32.totalorder %s808_s0, %s808_s0 }
  0x33   :  { %p815_p9 = por %p814_p8, %p813_p7 }
  0x35   :  { %p816_p10 = pnand %p815_p9, %p809_p6 }
  0x37   :  { %819 = shalt.err (!%p816_p10)
}
  0x38   :  { %86 = dma.hbm_to_vmem [thread:$0]  %s1039_s7, 512, %s81_s18, [#allocation9], %s871_s20, %s871_s20, %s872_s21  }
  0x39   :  { %s879_s26 = smov [#allocation11]  }
  0x3a   :  { %s94_s27 = sshll.u32 %s879_s26, 4  ;;  %s95_s27 = int_to_ptr.vmem [resolvable:$true] %s94_s27 }
  0x3b   :  { %s828_s28 = scalar_lea.vmem %s95_s27, 512  ;;  %p833_p12 = scmp.lt.s32.totalorder %s95_s27, %s95_s27 }
  0x3c   :  { %p829_p11 = scmp.ne.s32.totalorder %s95_s27, %s828_s28  ;;  %p834_p13 = scmp.lt.s32.totalorder %s828_s28, %s828_s28 }
  0x3e   :  { %p835_p0 = por %p834_p13, %p833_p12 }
  0x40   :  { %p836_p1 = pnand %p835_p0, %p829_p11 }
  0x42   :  { %839 = shalt.err (!%p836_p1)
}
  0x43   :  { %100 = dma.hbm_to_vmem [thread:$0]  %s1041_s9, 512, %s95_s27, [#allocation12], %s871_s20, %s871_s20, %s872_s21  }
  0x44   :  { %860 = dma.done.wait [#allocation3], 256  }
  0x45   :  { %861 = vsyncadd [#allocation3], 4294967040 }
  0x46   :  { %862 = dma.done.wait [#allocation6], 768  }
  0x47   :  { %863 = vsyncadd [#allocation6], 4294966528 }
  0x48   :  { %864 = dma.done.wait [#allocation9], 1024  }
  0x49   :  { %865 = vsyncadd [#allocation9], 4294966272 }
  0x4a   :  { %866 = dma.done.wait [#allocation12], 512  }
  0x4b   :  { %867 = vsyncadd [#allocation12], 4294966784  ;;  %v880_v0 = vmov 0.0   ;;  %vm881_vm0 = vmmov 0   ;;  %v694_v1 = vld [vmem:[#allocation5 + $0x8] sm:$0xff]   ;;  %v695_v2 = vld [vmem:[#allocation5] sm:$0xff]  }
  0x4c   :  { %625 = vmatprep.subr.bf16.mxu0 %v880_v0  ;;  %629 = vmatprep.mubr.msk.bf16.mxu0 %vm881_vm0, %v880_v0  ;;  %v122_v3 = vld [vmem:[#allocation2] sm:$0xff]  ;;  %v123_v4 = vld [vmem:[#allocation2 + $0x8] sm:$0xff]  ;;  %vm148_vm1 = vcmask 261120   ;;  %v696_v5 = vld [vmem:[#allocation7 + $0x18] sm:$0xff]   ;;  %vm235_vm2 = vcmask 523264  }
  0x4d   :  { %633 = vmatprep.subr.bf16.mxu1 %v880_v0  ;;  %641 = vmatprep.mubr.msk.bf16.mxu1 %vm881_vm0, %v880_v0  ;;  %v124_v6 = vpack.c.bf16 %v123_v4, %v122_v3  ;;  %v697_v7 = vld [vmem:[#allocation7 + $0x10] sm:$0xff]   ;;  %v698_v8 = vld [vmem:[#allocation7 + $0x8] sm:$0xff]   ;;  %v699_v9 = vld [vmem:[#allocation7] sm:$0xff]  }
  0x4e   :  { %626 = vmatpush3.bf16.msra.mxu0 %v694_v1  ;;  %634 = vmatpush3.bf16.msra.mxu1 %v696_v5  ;;  %v700_v10 = vld [vmem:[#allocation8 + $0x18] sm:$0xff]   ;;  %v572_v11 = vld [vmem:[%s1034_s2] ss:$0 sm:$0xff]  ;;  %v701_v21 = vld [vmem:[#allocation8 + $0x10] sm:$0xff]  }
  0x4f   :  { %627 = vmatprep.subr.bf16.mxu0 %v880_v0  ;;  %635 = vmatprep.subr.bf16.mxu1 %v880_v0  ;;  %v702_v22 = vld [vmem:[#allocation8 + $0x8] sm:$0xff]   ;;  %v703_v23 = vld [vmem:[#allocation8] sm:$0xff]   ;;  %v704_v24 = vld [vmem:[#allocation10 + $0x18] sm:$0xff]  }
  0x50   :  { %v576_v25 = vld [vmem:[%s1036_s4] ss:$0 sm:$0xff]  ;;  %v705_v35 = vld [vmem:[#allocation10 + $0x10] sm:$0xff]   ;;  %v706_v36 = vld [vmem:[#allocation10 + $0x8] sm:$0xff]  }
  0x51   :  { %v707_v37 = vld [vmem:[#allocation10] sm:$0xff]   ;;  %v708_v38 = vld [vmem:[#allocation11 + $0x18] sm:$0xff]   ;;  %v709_v49 = vld [vmem:[#allocation11 + $0x10] sm:$0xff]  }
  0x52   :  { %628 = vmatpush3.bf16.msra.mxu0 %v695_v2  ;;  %636 = vmatpush3.bf16.msra.mxu1 %v697_v7  ;;  %v582_v39 = vld [vmem:[%s1038_s6] ss:$0 sm:$0xff]  ;;  %v710_v50 = vld [vmem:[#allocation11 + $0x8] sm:$0xff]  }
  0x53   :  { %645 = vmatprep.subr.bf16.mxu0 %v880_v0  ;;  %637 = vmatprep.subr.bf16.mxu1 %v880_v0  ;;  %v711_v51 = vld [vmem:[#allocation11] sm:$0xff]  }
  0x54   :  { %v588_v52 = vld [vmem:[%s1040_s8] ss:$0 sm:$0xff]  ;;  %s882_s8 = smov [#allocation13]  }
  0x55   :  { %630 = vmatmul.mubr.msk.bf16.vlgmr.msra.gmra.mxu0 %vm148_vm1, %v124_v6  ;;  %v594_v62 = vld [vmem:[%s1042_s10] ss:$0 sm:$0xff]  ;;  %s557_s15 = sshll.u32 %s882_s8, 4  ;;  %s558_s15 = int_to_ptr.vmem [resolvable:$true] %s557_s15 }
  0x56   :  { %653 = vmatprep.mubr.msk.bf16.mxu0 %vm881_vm0, %v880_v0  ;;  %638 = vmatpush3.bf16.msra.mxu1 %v698_v8  ;;  %s840_s10 = scalar_lea.vmem %s558_s15, 256  ;;  %p845_p3 = scmp.lt.s32.totalorder %s558_s15, %s558_s15 }
  0x57   :  { %639 = vmatprep.subr.bf16.mxu1 %v880_v0  ;;  %646 = vmatpush3.bf16.msra.mxu0 %v700_v10  ;;  %p841_p2 = scmp.ne.s32.totalorder %s558_s15, %s840_s10  ;;  %p846_p4 = scmp.lt.s32.totalorder %s840_s10, %s840_s10 }
  0x58   :  { %647 = vmatprep.subr.bf16.mxu0 %v880_v0 }
  0x59   :  { %p847_p5 = por %p846_p4, %p845_p3 }
  0x5a   :  { %640 = vmatpush3.bf16.msra.mxu1 %v699_v9 }
  0x5b   :  { %657 = vmatprep.subr.bf16.mxu1 %v880_v0  ;;  %648 = vmatpush3.bf16.msra.mxu0 %v701_v21  ;;  %p848_p6 = pnand %p847_p5, %p841_p2 }
  0x5c   :  { %649 = vmatprep.subr.bf16.mxu0 %v880_v0 }
  0x5f   :  { %650 = vmatpush3.bf16.msra.mxu0 %v702_v22 }
  0x60   :  { %651 = vmatprep.subr.bf16.mxu0 %v880_v0 }
  0x63   :  { %652 = vmatpush3.bf16.msra.mxu0 %v703_v23 }
  0x64   :  { %669 = vmatprep.subr.bf16.mxu0 %v880_v0 }
 0x115   :  { %v186_v12 = vpop.f32.mrf.mxu0 }
 0x116   :  { %v187_v14 = vadd.f32 %v572_v11, %v186_v12 }
 0x117   :  { %v631_v13 = vpop.f32.mrf.mxu0 }
 0x118   :  { %v193_v18 = vmax.f32 %v187_v14, 0.0 }
 0x119   :  { %v189_v15 = vpop.f32.mrf.mxu0 }
 0x11a   :  { %v190_v16 = vadd.f32 %v572_v11, %v189_v15 }
 0x11b   :  { %v632_v17 = vpop.f32.mrf.mxu0 }
 0x11c   :  { %v194_v19 = vmax.f32 %v190_v16, 0.0 }
 0x11e   :  { %v195_v20 = vpack.c.bf16 %v194_v19, %v193_v18 }
 0x120   :  { %642 = vmatmul.mubr.msk.bf16.vlgmr.msra.gmra.mxu1 %vm235_vm2, %v195_v20 }
 0x121   :  { %665 = vmatprep.mubr.msk.bf16.mxu1 %vm881_vm0, %v880_v0  ;;  %658 = vmatpush3.bf16.msra.mxu1 %v704_v24 }
 0x122   :  { %659 = vmatprep.subr.bf16.mxu1 %v880_v0 }
 0x125   :  { %660 = vmatpush3.bf16.msra.mxu1 %v705_v35 }
 0x126   :  { %661 = vmatprep.subr.bf16.mxu1 %v880_v0 }
 0x129   :  { %662 = vmatpush3.bf16.msra.mxu1 %v706_v36 }
 0x12a   :  { %663 = vmatprep.subr.bf16.mxu1 %v880_v0 }
 0x12d   :  { %664 = vmatpush3.bf16.msra.mxu1 %v707_v37 }
 0x1e0   :  { %v273_v26 = vpop.f32.mrf.mxu1 }
 0x1e1   :  { %v274_v28 = vadd.f32 %v576_v25, %v273_v26 }
 0x1e2   :  { %v643_v27 = vpop.f32.mrf.mxu1 }
 0x1e3   :  { %v280_v32 = vmax.f32 %v274_v28, 0.0 }
 0x1e4   :  { %v276_v29 = vpop.f32.mrf.mxu1 }
 0x1e5   :  { %v277_v30 = vadd.f32 %v576_v25, %v276_v29 }
 0x1e6   :  { %v644_v31 = vpop.f32.mrf.mxu1 }
 0x1e7   :  { %v281_v33 = vmax.f32 %v277_v30, 0.0 }
 0x1e9   :  { %v282_v34 = vpack.c.bf16 %v281_v33, %v280_v32 }
 0x1eb   :  { %654 = vmatmul.mubr.msk.bf16.vlgmr.msra.gmra.mxu0 %vm235_vm2, %v282_v34 }
 0x1ec   :  { %677 = vmatprep.mubr.msk.bf16.mxu0 %vm881_vm0, %v880_v0  ;;  %670 = vmatpush3.bf16.msra.mxu0 %v708_v38 }
 0x1ed   :  { %671 = vmatprep.subr.bf16.mxu0 %v880_v0 }
 0x1f0   :  { %672 = vmatpush3.bf16.msra.mxu0 %v709_v49 }
 0x1f1   :  { %673 = vmatprep.subr.bf16.mxu0 %v880_v0 }
 0x1f4   :  { %674 = vmatpush3.bf16.msra.mxu0 %v710_v50 }
 0x1f5   :  { %675 = vmatprep.subr.bf16.mxu0 %v880_v0 }
 0x1f8   :  { %676 = vmatpush3.bf16.msra.mxu0 %v711_v51 }
 0x2ab   :  { %v359_v40 = vpop.f32.mrf.mxu0 }
 0x2ac   :  { %v360_v42 = vadd.f32 %v582_v39, %v359_v40 }
 0x2ad   :  { %v655_v41 = vpop.f32.mrf.mxu0 }
 0x2ae   :  { %v366_v46 = vmax.f32 %v360_v42, 0.0 }
 0x2af   :  { %v362_v43 = vpop.f32.mrf.mxu0 }
 0x2b0   :  { %v363_v44 = vadd.f32 %v582_v39, %v362_v43 }
 0x2b1   :  { %v656_v45 = vpop.f32.mrf.mxu0 }
 0x2b2   :  { %v367_v47 = vmax.f32 %v363_v44, 0.0 }
 0x2b4   :  { %v368_v48 = vpack.c.bf16 %v367_v47, %v366_v46 }
 0x2b6   :  { %666 = vmatmul.mubr.msk.bf16.vlgmr.msra.gmra.mxu1 %vm235_vm2, %v368_v48 }
 0x376   :  { %v445_v53 = vpop.f32.mrf.mxu1 }
 0x377   :  { %v446_v55 = vadd.f32 %v588_v52, %v445_v53 }
 0x378   :  { %v667_v54 = vpop.f32.mrf.mxu1 }
 0x379   :  { %v452_v59 = vmax.f32 %v446_v55, 0.0 }
 0x37a   :  { %v448_v56 = vpop.f32.mrf.mxu1 }
 0x37b   :  { %v449_v57 = vadd.f32 %v588_v52, %v448_v56 }
 0x37c   :  { %v668_v58 = vpop.f32.mrf.mxu1 }
 0x37d   :  { %v453_v60 = vmax.f32 %v449_v57, 0.0 }
 0x37f   :  { %v454_v61 = vpack.c.bf16 %v453_v60, %v452_v59 }
 0x381   :  { %678 = vmatmul.mubr.msk.bf16.vlgmr.msra.gmra.mxu0 %vm235_vm2, %v454_v61 }
 0x441   :  { %v531_v63 = vpop.f32.mrf.mxu0 }
 0x442   :  { %v532_v0 = vadd.f32 %v594_v62, %v531_v63 }
 0x443   :  { %v679_v1 = vpop.f32.mrf.mxu0 }
 0x444   :  { %v600_v2 = vmul.f32 -1.442695, %v532_v0 }
 0x445   :  { %v534_v3 = vpop.f32.mrf.mxu0 }
 0x446   :  { %712 = vpow2.f32 %v600_v2  ;;  %v535_v4 = vadd.f32 %v594_v62, %v534_v3 }
 0x447   :  { %v680_v5 = vpop.f32.mrf.mxu0 }
 0x448   :  { %v601_v6 = vmul.f32 -1.442695, %v535_v4 }
 0x44a   :  { %714 = vpow2.f32 %v601_v6 }
 0x453   :  { %v713_v7 = vpop.eup %712 }
 0x454   :  { %v544_v8 = vadd.f32 1.0, %v713_v7 }
 0x456   :  { %716 = vrcp.f32 %v544_v8 }
 0x457   :  { %v715_v9 = vpop.eup %714 }
 0x458   :  { %v545_v10 = vadd.f32 1.0, %v715_v9 }
 0x45a   :  { %718 = vrcp.f32 %v545_v10 }
 0x463   :  { %v717_v11 = vpop.eup %716 }
 0x464   :  { %550 = vst [vmem:[#allocation13] sm:$0xff] %v717_v11 }
 0x467   :  { %v719_v12 = vpop.eup %718 }
 0x468   :  { %551 = vst [vmem:[#allocation13 + $0x8] sm:$0xff] %v719_v12 }
 0x469   :  { %851 = shalt.err (!%p848_p6)
}
 0x46a   :  { %563 = dma.vmem_to_hbm [thread:$0]  %s558_s15, 256, %s1043_s11, [#allocation4], %s875_s12, %s875_s12, %s876_s13  }
 0x46b   :  { %868 = dma.done.wait [#allocation4], 256  }
 0x46c   :  { %869 = vsyncadd [#allocation4], 4294967040 }
 0x46d   :  { %567 = vsyncpa [#allocation3], 1 }
 0x46e   :  { %568 = vsyncpa [#allocation6], 1 }
 0x46f   :  { %569 = vsyncpa [#allocation9], 1 }
 0x470   :  { %570 = vsyncpa [#allocation12], 1 }
 0x471   :  { %571 = vsyncpa [#allocation4], 1 }

</bundles_post_ra>
